<compile_context>
chip_gen: v6e
topology: v6e:2x2x1
jax: 0.10.0
libtpu: 0.0.40
codegen_flags: <defaults>
</compile_context>

<pallas_src>
import functools

import jax
import jax.numpy as jnp
from jax.experimental import pallas as pl
from jax.experimental.pallas import tpu as pltpu


def _round_up(x: int, m: int) -> int:
    return ((x + m - 1) // m) * m


def _sigmoid(v):
    # torch.sigmoid semantics; exp lowers to the EUP.
    return 1.0 / (1.0 + jnp.exp(-v))


def _dcgru_cell_kernel(g_ref, x_ref, h_ref, wx_ref, whzr_ref, whc_ref,
                       bzr_ref, bc_ref, o_ref, *, K: int):
    """One full DCGRU-cell step for one batch element, entirely in VMEM.

    g_ref    : (K*Np, Np)     all K supports stacked row-wise (node dim padded to 8)
    x_ref    : (1, Np, D)     x_t for this batch element
    h_ref    : (1, Np, HP)    previous hidden state, zero-padded H -> HP lanes
    wx_ref   : (K, D, 3*HP)   x-part weights, column slabs [z | r | c]
    whzr_ref : (K, HP, 2*HP)  h-part gate weights, column slabs [z | r]
    whc_ref  : (K, HP, HP)    h-part candidate weights
    bzr_ref  : (1, 2*HP)      gate biases [bz | br] (zero-padded)
    bc_ref   : (1, HP)        candidate bias (zero-padded)
    o_ref    : (1, Np, HP)    h_t (lane-dense, padded; wrapper slices back to N, H)
    """
    Np = x_ref.shape[1]
    HP = h_ref.shape[2]
    f32 = jnp.float32

    gf = g_ref[...]                                        # (K*Np, Np)
    x = x_ref[0]                                           # (Np, D)
    h = h_ref[0]                                           # (Np, HP)

    # --- stacked graph diffusion: one MXU push covers all K supports ---------
    sx = jnp.dot(gf, x, preferred_element_type=f32)        # (K*Np, D)
    sh = jnp.dot(gf, h, preferred_element_type=f32)        # (K*Np, HP)

    # --- projections: accumulate static W row-blocks per k (no lane concat) --
    x_acc = jnp.zeros((Np, 3 * HP), f32)   # x-part contributions  [z | r | c]
    g_acc = jnp.zeros((Np, 2 * HP), f32)   # h-part gate contribs  [z | r]
    for k in range(K):                     # K small & static -> fully unrolled
        sxk = sx[k * Np:(k + 1) * Np]      # static sublane slices (Np % 8 == 0)
        shk = sh[k * Np:(k + 1) * Np]
        x_acc = x_acc + jnp.dot(sxk, wx_ref[k], preferred_element_type=f32)
        g_acc = g_acc + jnp.dot(shk, whzr_ref[k], preferred_element_type=f32)

    gate = g_acc + x_acc[:, :2 * HP] + bzr_ref[...]        # (Np, 2*HP)
    z = _sigmoid(gate[:, :HP])                             # update gate
    r = _sigmoid(gate[:, HP:])                             # reset gate

    # --- candidate: diffuse (r * h), project, reuse the x-part from x_acc ----
    shr = jnp.dot(gf, r * h, preferred_element_type=f32)   # (K*Np, HP)
    c_acc = x_acc[:, 2 * HP:] + bc_ref[...]
    for k in range(K):
        c_acc = c_acc + jnp.dot(shr[k * Np:(k + 1) * Np], whc_ref[k],
                                preferred_element_type=f32)
    c = jnp.tanh(c_acc)                                    # native EUP tanh

    # GRU state update; padded lanes of h are 0, z there is 0.5, c is 0 -> stay 0.
    h_t = (1.0 - z) * h + z * c
    o_ref[0] = h_t.astype(o_ref.dtype)                     # full-width lane-dense store


@jax.jit
def dcgru_cell_forward(P, x_t, h_t_1, W_gate, b_gate, W_cand, b_cand):
    """Fused Pallas DCGRU cell forward. Returns h_t: (B, N, H)."""
    K, N, _ = P.shape
    B, _, D = x_t.shape
    H = h_t_1.shape[-1]
    Dc = D + H
    HP = max(128, _round_up(H, 128))       # lane-dense padded hidden width
    Np = _round_up(N, 8)                   # sublane-aligned padded node count

    # ---- parameter repacking: k-major row blocks, x/h split, zero-pad to HP ----
    Wg = W_gate.reshape(K, Dc, 2 * H)      # row block k -> support k features
    Wc = W_cand.reshape(K, Dc, H)
    Wg_x, Wg_h = Wg[:, :D, :], Wg[:, D:, :]
    Wc_x, Wc_h = Wc[:, :D, :], Wc[:, D:, :]

    def pad_last(a, width):
        return jnp.pad(a, [(0, 0)] * (a.ndim - 1) + [(0, width - a.shape[-1])])

    # x-part weights, column slabs [z | r | c], each HP lanes wide
    wx_all = jnp.concatenate(
        [pad_last(Wg_x[..., :H], HP), pad_last(Wg_x[..., H:], HP),
         pad_last(Wc_x, HP)], axis=-1)                               # (K, D, 3*HP)
    # h-part gate weights, column slabs [z | r]; rows padded H -> HP
    wh_zr = jnp.concatenate(
        [pad_last(Wg_h[..., :H], HP), pad_last(Wg_h[..., H:], HP)], axis=-1)
    wh_zr = jnp.pad(wh_zr, ((0, 0), (0, HP - H), (0, 0)))            # (K, HP, 2*HP)
    # h-part candidate weights, rows & columns padded to HP
    wh_c = jnp.pad(pad_last(Wc_h, HP), ((0, 0), (0, HP - H), (0, 0)))  # (K, HP, HP)

    b_zr = jnp.concatenate([pad_last(b_gate[:H], HP),
                            pad_last(b_gate[H:], HP)]).reshape(1, 2 * HP)
    b_c = pad_last(b_cand, HP).reshape(1, HP)

    # ---- data padding: node dim -> Np (zeros), hidden lanes -> HP (zeros) -----
    P_pad = jnp.pad(P, ((0, 0), (0, Np - N), (0, Np - N)))
    g_flat = P_pad.reshape(K * Np, Np)     # stack K supports row-wise (row-major, free)
    x_pad = jnp.pad(x_t, ((0, 0), (0, Np - N), (0, 0)))              # (B, Np, D)
    h_pad = jnp.pad(h_t_1, ((0, 0), (0, Np - N), (0, H if False else 0)))
    h_pad = pad_last(jnp.pad(h_t_1, ((0, 0), (0, Np - N), (0, 0))), HP)  # (B, Np, HP)

    kernel = functools.partial(_dcgru_cell_kernel, K=K)

    flops = B * (
        2 * K * Np * Np * (D + 2 * HP)               # graph diffusion (sx, sh, shr)
        + 2 * K * Np * (3 * D * HP + 3 * HP * HP)    # per-k projections
        + 10 * Np * HP)                              # gate arithmetic (approx)
    bytes_accessed = 4 * (
        K * Np * Np + B * Np * (D + 2 * HP)          # supports, x, h, output
        + K * (3 * D * HP + 3 * HP * HP) + 3 * HP)

    out = pl.pallas_call(
        kernel,
        out_shape=jax.ShapeDtypeStruct((B, Np, HP), x_t.dtype),
        grid_spec=pltpu.PrefetchScalarGridSpec(
            num_scalar_prefetch=0,
            grid=(B,),                                             # parallel over batch
            in_specs=[
                pl.BlockSpec((K * Np, Np), lambda b: (0, 0)),      # stacked supports
                pl.BlockSpec((1, Np, D), lambda b: (b, 0, 0)),     # x_t[b]
                pl.BlockSpec((1, Np, HP), lambda b: (b, 0, 0)),    # h_{t-1}[b] (padded)
                pl.BlockSpec((K, D, 3 * HP), lambda b: (0, 0, 0)),
                pl.BlockSpec((K, HP, 2 * HP), lambda b: (0, 0, 0)),
                pl.BlockSpec((K, HP, HP), lambda b: (0, 0, 0)),
                pl.BlockSpec((1, 2 * HP), lambda b: (0, 0)),
                pl.BlockSpec((1, HP), lambda b: (0, 0)),
            ],
            out_specs=pl.BlockSpec((1, Np, HP), lambda b: (b, 0, 0)),
        ),
        compiler_params=pltpu.CompilerParams(
            dimension_semantics=("parallel",),
        ),
        cost_estimate=pl.CostEstimate(
            flops=flops,
            transcendentals=3 * B * Np * HP,
            bytes_accessed=bytes_accessed,
        ),
    )(g_flat, x_pad, h_pad, wx_all, wh_zr, wh_c, b_zr, b_c)

    return out[:, :N, :H]                  # drop node / lane padding


# ----------------------------- pure-JAX reference -----------------------------

def _gcn_reference(G, x, W, b):
    """GCN.forward with activation=None (as constructed inside DCGRU_Cell)."""
    K = G.shape[0]
    supports = [jnp.einsum("ij,bjp->bip", G[k], x) for k in range(K)]
    support_cat = jnp.concatenate(supports, axis=-1)
    return jnp.einsum("bip,pq->biq", support_cat, W) + b


def dcgru_cell_reference(P, x_t, h_t_1, W_gate, b_gate, W_cand, b_cand):
    H = h_t_1.shape[-1]
    x_h = jnp.concatenate([x_t, h_t_1], axis=-1)
    x_h_conv = _gcn_reference(P, x_h, W_gate, b_gate)
    z, r = x_h_conv[..., :H], x_h_conv[..., H:]
    update_gate = jax.nn.sigmoid(z)
    reset_gate = jax.nn.sigmoid(r)
    candidate = jnp.concatenate([x_t, reset_gate * h_t_1], axis=-1)
    cand_conv = jnp.tanh(_gcn_reference(P, candidate, W_cand, b_cand))
    return (1.0 - update_gate) * h_t_1 + update_gate * cand_conv


if __name__ == "__main__":
    K = 3        # number of diffusion supports
    B = 2        # batch size
    N = 16       # n_nodes
    D_IN = 4     # input_dim
    HID = 32     # hidden_dim

    key = jax.random.PRNGKey(0)
    kP, kx, kh, kwg, kwc, kbg, kbc = jax.random.split(key, 7)

    P = jax.random.normal(kP, (K, N, N), dtype=jnp.float32)
    x_t = jax.random.normal(kx, (B, N, D_IN), dtype=jnp.float32)
    h_prev = jax.random.normal(kh, (B, N, HID), dtype=jnp.float32)

    Dc = D_IN + HID

    def xavier(k, shape):
        std = (2.0 / (shape[0] + shape[1])) ** 0.5
        return std * jax.random.normal(k, shape, dtype=jnp.float32)

    W_gate = xavier(kwg, (K * Dc, 2 * HID))
    W_cand = xavier(kwc, (K * Dc, HID))
    # Small non-zero biases so the (padded) bias path is actually exercised.
    b_gate = 0.1 * jax.random.normal(kbg, (2 * HID,), dtype=jnp.float32)
    b_cand = 0.1 * jax.random.normal(kbc, (HID,), dtype=jnp.float32)

    h_t = dcgru_cell_forward(P, x_t, h_prev, W_gate, b_gate, W_cand, b_cand)
    h_t = jax.block_until_ready(h_t)

    ref = dcgru_cell_reference(P, x_t, h_prev, W_gate, b_gate, W_cand, b_cand)
    assert h_t.shape == (B, N, HID), h_t.shape
    max_err = float(jnp.max(jnp.abs(h_t - ref)))
    assert jnp.allclose(h_t, ref, atol=2e-4, rtol=2e-4), max_err

    print("KERNEL_OK")
</pallas_src>

<mosaic_0001>
module attributes {stable_mosaic.version = 11 : i64} {
  func.func @_dcgru_cell_kernel(%arg0: i32, %arg1: memref<48x16xf32, #tpu.memory_space<vmem>>, %arg2: memref<1x16x4xf32, #tpu.memory_space<vmem>>, %arg3: memref<1x16x128xf32, #tpu.memory_space<vmem>>, %arg4: memref<3x4x384xf32, #tpu.memory_space<vmem>>, %arg5: memref<3x128x256xf32, #tpu.memory_space<vmem>>, %arg6: memref<3x128x128xf32, #tpu.memory_space<vmem>>, %arg7: memref<1x256xf32, #tpu.memory_space<vmem>>, %arg8: memref<1x128xf32, #tpu.memory_space<vmem>>, %arg9: memref<1x16x128xf32, #tpu.memory_space<vmem>>) attributes {dimension_semantics = [#tpu.dimension_semantics<parallel>], iteration_bounds = array<i64: 2>, scalar_prefetch = 0 : i64, scratch_operands = 0 : i64, tpu.core_type = #tpu.core_type<tc>, window_params = [{pipeline_mode = #tpu.pipeline_mode<synchronous>, transform_indices = @transform_0, window_bounds = array<i64: 48, 16>}, {transform_indices = @transform_1, window_bounds = array<i64: 1, 16, 4>}, {transform_indices = @transform_2, window_bounds = array<i64: 1, 16, 128>}, {pipeline_mode = #tpu.pipeline_mode<synchronous>, transform_indices = @transform_3, window_bounds = array<i64: 3, 4, 384>}, {pipeline_mode = #tpu.pipeline_mode<synchronous>, transform_indices = @transform_4, window_bounds = array<i64: 3, 128, 256>}, {pipeline_mode = #tpu.pipeline_mode<synchronous>, transform_indices = @transform_5, window_bounds = array<i64: 3, 128, 128>}, {pipeline_mode = #tpu.pipeline_mode<synchronous>, transform_indices = @transform_6, window_bounds = array<i64: 1, 256>}, {pipeline_mode = #tpu.pipeline_mode<synchronous>, transform_indices = @transform_7, window_bounds = array<i64: 1, 128>}, {transform_indices = @transform_8, window_bounds = array<i64: 1, 16, 128>}]} {
    %c0 = arith.constant 0 : index
    %c0_0 = arith.constant 0 : index
    %0 = vector.load %arg1[%c0, %c0_0] : memref<48x16xf32, #tpu.memory_space<vmem>>, vector<48x16xf32>
    %c0_1 = arith.constant 0 : index
    %c0_2 = arith.constant 0 : index
    %c0_3 = arith.constant 0 : index
    %1 = vector.load %arg2[%c0_1, %c0_2, %c0_3] : memref<1x16x4xf32, #tpu.memory_space<vmem>>, vector<1x16x4xf32>
    %2 = vector.shape_cast %1 : vector<1x16x4xf32> to vector<16x4xf32>
    %c0_4 = arith.constant 0 : index
    %c0_5 = arith.constant 0 : index
    %c0_6 = arith.constant 0 : index
    %3 = vector.load %arg3[%c0_4, %c0_5, %c0_6] : memref<1x16x128xf32, #tpu.memory_space<vmem>>, vector<1x16x128xf32>
    %4 = vector.shape_cast %3 : vector<1x16x128xf32> to vector<16x128xf32>
    %cst = arith.constant dense<0.000000e+00> : vector<48x4xf32>
    %5 = tpu.matmul %0, %2, %cst {dimension_numbers = #tpu.dot_dimension_numbers<[1], [0], [0], [1], [0, 0, 1, 1], [], []>} : vector<48x16xf32>, vector<16x4xf32>, vector<48x4xf32> -> vector<48x4xf32>
    %cst_7 = arith.constant dense<0.000000e+00> : vector<48x128xf32>
    %6 = tpu.matmul %0, %4, %cst_7 {dimension_numbers = #tpu.dot_dimension_numbers<[1], [0], [0], [1], [0, 0, 1, 1], [], []>} : vector<48x16xf32>, vector<16x128xf32>, vector<48x128xf32> -> vector<48x128xf32>
    %cst_8 = arith.constant 0.000000e+00 : f32
    %7 = vector.broadcast %cst_8 : f32 to vector<16x384xf32>
    %cst_9 = arith.constant 0.000000e+00 : f32
    %8 = vector.broadcast %cst_9 : f32 to vector<16x256xf32>
    %9 = vector.extract_strided_slice %5 {offsets = [0, 0], sizes = [16, 4], strides = [1, 1]} : vector<48x4xf32> to vector<16x4xf32>
    %10 = vector.extract_strided_slice %6 {offsets = [0, 0], sizes = [16, 128], strides = [1, 1]} : vector<48x128xf32> to vector<16x128xf32>
    %c0_10 = arith.constant 0 : index
    %c0_11 = arith.constant 0 : index
    %c0_12 = arith.constant 0 : index
    %11 = vector.load %arg4[%c0_10, %c0_11, %c0_12] : memref<3x4x384xf32, #tpu.memory_space<vmem>>, vector<1x4x384xf32>
    %12 = vector.shape_cast %11 : vector<1x4x384xf32> to vector<4x384xf32>
    %cst_13 = arith.constant dense<0.000000e+00> : vector<16x384xf32>
    %13 = tpu.matmul %9, %12, %cst_13 {dimension_numbers = #tpu.dot_dimension_numbers<[1], [0], [0], [1], [0, 0, 1, 1], [], []>} : vector<16x4xf32>, vector<4x384xf32>, vector<16x384xf32> -> vector<16x384xf32>
    %14 = arith.addf %7, %13 : vector<16x384xf32>
    %c0_14 = arith.constant 0 : index
    %c0_15 = arith.constant 0 : index
    %c0_16 = arith.constant 0 : index
    %15 = vector.load %arg5[%c0_14, %c0_15, %c0_16] : memref<3x128x256xf32, #tpu.memory_space<vmem>>, vector<1x128x256xf32>
    %16 = vector.shape_cast %15 : vector<1x128x256xf32> to vector<128x256xf32>
    %cst_17 = arith.constant dense<0.000000e+00> : vector<16x256xf32>
    %17 = tpu.matmul %10, %16, %cst_17 {dimension_numbers = #tpu.dot_dimension_numbers<[1], [0], [0], [1], [0, 0, 1, 1], [], []>} : vector<16x128xf32>, vector<128x256xf32>, vector<16x256xf32> -> vector<16x256xf32>
    %18 = arith.addf %8, %17 : vector<16x256xf32>
    %19 = vector.extract_strided_slice %5 {offsets = [16, 0], sizes = [16, 4], strides = [1, 1]} : vector<48x4xf32> to vector<16x4xf32>
    %20 = vector.extract_strided_slice %6 {offsets = [16, 0], sizes = [16, 128], strides = [1, 1]} : vector<48x128xf32> to vector<16x128xf32>
    %c1 = arith.constant 1 : index
    %c0_18 = arith.constant 0 : index
    %c0_19 = arith.constant 0 : index
    %21 = vector.load %arg4[%c1, %c0_18, %c0_19] : memref<3x4x384xf32, #tpu.memory_space<vmem>>, vector<1x4x384xf32>
    %22 = vector.shape_cast %21 : vector<1x4x384xf32> to vector<4x384xf32>
    %cst_20 = arith.constant dense<0.000000e+00> : vector<16x384xf32>
    %23 = tpu.matmul %19, %22, %cst_20 {dimension_numbers = #tpu.dot_dimension_numbers<[1], [0], [0], [1], [0, 0, 1, 1], [], []>} : vector<16x4xf32>, vector<4x384xf32>, vector<16x384xf32> -> vector<16x384xf32>
    %24 = arith.addf %14, %23 : vector<16x384xf32>
    %c1_21 = arith.constant 1 : index
    %c0_22 = arith.constant 0 : index
    %c0_23 = arith.constant 0 : index
    %25 = vector.load %arg5[%c1_21, %c0_22, %c0_23] : memref<3x128x256xf32, #tpu.memory_space<vmem>>, vector<1x128x256xf32>
    %26 = vector.shape_cast %25 : vector<1x128x256xf32> to vector<128x256xf32>
    %cst_24 = arith.constant dense<0.000000e+00> : vector<16x256xf32>
    %27 = tpu.matmul %20, %26, %cst_24 {dimension_numbers = #tpu.dot_dimension_numbers<[1], [0], [0], [1], [0, 0, 1, 1], [], []>} : vector<16x128xf32>, vector<128x256xf32>, vector<16x256xf32> -> vector<16x256xf32>
    %28 = arith.addf %18, %27 : vector<16x256xf32>
    %29 = vector.extract_strided_slice %5 {offsets = [32, 0], sizes = [16, 4], strides = [1, 1]} : vector<48x4xf32> to vector<16x4xf32>
    %30 = vector.extract_strided_slice %6 {offsets = [32, 0], sizes = [16, 128], strides = [1, 1]} : vector<48x128xf32> to vector<16x128xf32>
    %c2 = arith.constant 2 : index
    %c0_25 = arith.constant 0 : index
    %c0_26 = arith.constant 0 : index
    %31 = vector.load %arg4[%c2, %c0_25, %c0_26] : memref<3x4x384xf32, #tpu.memory_space<vmem>>, vector<1x4x384xf32>
    %32 = vector.shape_cast %31 : vector<1x4x384xf32> to vector<4x384xf32>
    %cst_27 = arith.constant dense<0.000000e+00> : vector<16x384xf32>
    %33 = tpu.matmul %29, %32, %cst_27 {dimension_numbers = #tpu.dot_dimension_numbers<[1], [0], [0], [1], [0, 0, 1, 1], [], []>} : vector<16x4xf32>, vector<4x384xf32>, vector<16x384xf32> -> vector<16x384xf32>
    %34 = arith.addf %24, %33 : vector<16x384xf32>
    %c2_28 = arith.constant 2 : index
    %c0_29 = arith.constant 0 : index
    %c0_30 = arith.constant 0 : index
    %35 = vector.load %arg5[%c2_28, %c0_29, %c0_30] : memref<3x128x256xf32, #tpu.memory_space<vmem>>, vector<1x128x256xf32>
    %36 = vector.shape_cast %35 : vector<1x128x256xf32> to vector<128x256xf32>
    %cst_31 = arith.constant dense<0.000000e+00> : vector<16x256xf32>
    %37 = tpu.matmul %30, %36, %cst_31 {dimension_numbers = #tpu.dot_dimension_numbers<[1], [0], [0], [1], [0, 0, 1, 1], [], []>} : vector<16x128xf32>, vector<128x256xf32>, vector<16x256xf32> -> vector<16x256xf32>
    %38 = arith.addf %28, %37 : vector<16x256xf32>
    %39 = vector.extract_strided_slice %34 {offsets = [0, 0], sizes = [16, 256], strides = [1, 1]} : vector<16x384xf32> to vector<16x256xf32>
    %40 = arith.addf %38, %39 : vector<16x256xf32>
    %c0_32 = arith.constant 0 : index
    %c0_33 = arith.constant 0 : index
    %41 = vector.load %arg7[%c0_32, %c0_33] : memref<1x256xf32, #tpu.memory_space<vmem>>, vector<1x256xf32>
    %42 = vector.broadcast %41 : vector<1x256xf32> to vector<16x256xf32>
    %43 = arith.addf %40, %42 : vector<16x256xf32>
    %44 = vector.extract_strided_slice %43 {offsets = [0, 0], sizes = [16, 128], strides = [1, 1]} : vector<16x256xf32> to vector<16x128xf32>
    %cst_34 = arith.constant 0.000000e+00 : f32
    %45 = vector.broadcast %cst_34 : f32 to vector<16x128xf32>
    %46 = arith.subf %45, %44 : vector<16x128xf32>
    %47 = math.exp %46 : vector<16x128xf32>
    %cst_35 = arith.constant 1.000000e+00 : f32
    %48 = vector.broadcast %cst_35 : f32 to vector<16x128xf32>
    %49 = arith.addf %48, %47 : vector<16x128xf32>
    %cst_36 = arith.constant 1.000000e+00 : f32
    %50 = vector.broadcast %cst_36 : f32 to vector<16x128xf32>
    %51 = arith.divf %50, %49 : vector<16x128xf32>
    %52 = vector.extract_strided_slice %43 {offsets = [0, 128], sizes = [16, 128], strides = [1, 1]} : vector<16x256xf32> to vector<16x128xf32>
    %cst_37 = arith.constant 0.000000e+00 : f32
    %53 = vector.broadcast %cst_37 : f32 to vector<16x128xf32>
    %54 = arith.subf %53, %52 : vector<16x128xf32>
    %55 = math.exp %54 : vector<16x128xf32>
    %cst_38 = arith.constant 1.000000e+00 : f32
    %56 = vector.broadcast %cst_38 : f32 to vector<16x128xf32>
    %57 = arith.addf %56, %55 : vector<16x128xf32>
    %cst_39 = arith.constant 1.000000e+00 : f32
    %58 = vector.broadcast %cst_39 : f32 to vector<16x128xf32>
    %59 = arith.divf %58, %57 : vector<16x128xf32>
    %60 = arith.mulf %59, %4 : vector<16x128xf32>
    %cst_40 = arith.constant dense<0.000000e+00> : vector<48x128xf32>
    %61 = tpu.matmul %0, %60, %cst_40 {dimension_numbers = #tpu.dot_dimension_numbers<[1], [0], [0], [1], [0, 0, 1, 1], [], []>} : vector<48x16xf32>, vector<16x128xf32>, vector<48x128xf32> -> vector<48x128xf32>
    %62 = vector.extract_strided_slice %34 {offsets = [0, 256], sizes = [16, 128], strides = [1, 1]} : vector<16x384xf32> to vector<16x128xf32>
    %c0_41 = arith.constant 0 : index
    %c0_42 = arith.constant 0 : index
    %63 = vector.load %arg8[%c0_41, %c0_42] : memref<1x128xf32, #tpu.memory_space<vmem>>, vector<1x128xf32>
    %64 = vector.broadcast %63 : vector<1x128xf32> to vector<16x128xf32>
    %65 = arith.addf %62, %64 : vector<16x128xf32>
    %66 = vector.extract_strided_slice %61 {offsets = [0, 0], sizes = [16, 128], strides = [1, 1]} : vector<48x128xf32> to vector<16x128xf32>
    %c0_43 = arith.constant 0 : index
    %c0_44 = arith.constant 0 : index
    %c0_45 = arith.constant 0 : index
    %67 = vector.load %arg6[%c0_43, %c0_44, %c0_45] : memref<3x128x128xf32, #tpu.memory_space<vmem>>, vector<1x128x128xf32>
    %68 = vector.shape_cast %67 : vector<1x128x128xf32> to vector<128x128xf32>
    %cst_46 = arith.constant dense<0.000000e+00> : vector<16x128xf32>
    %69 = tpu.matmul %66, %68, %cst_46 {dimension_numbers = #tpu.dot_dimension_numbers<[1], [0], [0], [1], [0, 0, 1, 1], [], []>} : vector<16x128xf32>, vector<128x128xf32>, vector<16x128xf32> -> vector<16x128xf32>
    %70 = arith.addf %65, %69 : vector<16x128xf32>
    %71 = vector.extract_strided_slice %61 {offsets = [16, 0], sizes = [16, 128], strides = [1, 1]} : vector<48x128xf32> to vector<16x128xf32>
    %c1_47 = arith.constant 1 : index
    %c0_48 = arith.constant 0 : index
    %c0_49 = arith.constant 0 : index
    %72 = vector.load %arg6[%c1_47, %c0_48, %c0_49] : memref<3x128x128xf32, #tpu.memory_space<vmem>>, vector<1x128x128xf32>
    %73 = vector.shape_cast %72 : vector<1x128x128xf32> to vector<128x128xf32>
    %cst_50 = arith.constant dense<0.000000e+00> : vector<16x128xf32>
    %74 = tpu.matmul %71, %73, %cst_50 {dimension_numbers = #tpu.dot_dimension_numbers<[1], [0], [0], [1], [0, 0, 1, 1], [], []>} : vector<16x128xf32>, vector<128x128xf32>, vector<16x128xf32> -> vector<16x128xf32>
    %75 = arith.addf %70, %74 : vector<16x128xf32>
    %76 = vector.extract_strided_slice %61 {offsets = [32, 0], sizes = [16, 128], strides = [1, 1]} : vector<48x128xf32> to vector<16x128xf32>
    %c2_51 = arith.constant 2 : index
    %c0_52 = arith.constant 0 : index
    %c0_53 = arith.constant 0 : index
    %77 = vector.load %arg6[%c2_51, %c0_52, %c0_53] : memref<3x128x128xf32, #tpu.memory_space<vmem>>, vector<1x128x128xf32>
    %78 = vector.shape_cast %77 : vector<1x128x128xf32> to vector<128x128xf32>
    %cst_54 = arith.constant dense<0.000000e+00> : vector<16x128xf32>
    %79 = tpu.matmul %76, %78, %cst_54 {dimension_numbers = #tpu.dot_dimension_numbers<[1], [0], [0], [1], [0, 0, 1, 1], [], []>} : vector<16x128xf32>, vector<128x128xf32>, vector<16x128xf32> -> vector<16x128xf32>
    %80 = arith.addf %75, %79 : vector<16x128xf32>
    %81 = math.tanh %80 : vector<16x128xf32>
    %cst_55 = arith.constant 1.000000e+00 : f32
    %82 = vector.broadcast %cst_55 : f32 to vector<16x128xf32>
    %83 = arith.subf %82, %51 : vector<16x128xf32>
    %84 = arith.mulf %83, %4 : vector<16x128xf32>
    %85 = arith.mulf %51, %81 : vector<16x128xf32>
    %86 = arith.addf %84, %85 : vector<16x128xf32>
    %c0_56 = arith.constant 0 : index
    %c0_57 = arith.constant 0 : index
    %c0_58 = arith.constant 0 : index
    %87 = vector.load %arg9[%c0_56, %c0_57, %c0_58] : memref<1x16x128xf32, #tpu.memory_space<vmem>>, vector<1x16x128xf32>
    %88 = vector.shape_cast %87 : vector<1x16x128xf32> to vector<16x128xf32>
    %89 = vector.shape_cast %86 : vector<16x128xf32> to vector<1x16x128xf32>
    tpu.vector_store %arg9[%c0_56, %c0_57, %c0_58], %89 {strides = array<i32>} : memref<1x16x128xf32, #tpu.memory_space<vmem>>, vector<1x16x128xf32>,
    return
  }
  func.func @transform_0(%arg0: i32) -> (i32, i32) {
    %c0_i32 = arith.constant 0 : i32
    %c0_i32_0 = arith.constant 0 : i32
    %c0_i32_1 = arith.constant 0 : i32
    return %c0_i32, %c0_i32_0 : i32, i32
  }
  func.func @transform_1(%arg0: i32) -> (i32, i32, i32) {
    %c0_i32 = arith.constant 0 : i32
    %c0_i32_0 = arith.constant 0 : i32
    %c0_i32_1 = arith.constant 0 : i32
    return %arg0, %c0_i32, %c0_i32_0 : i32, i32, i32
  }
  func.func @transform_2(%arg0: i32) -> (i32, i32, i32) {
    %c0_i32 = arith.constant 0 : i32
    %c0_i32_0 = arith.constant 0 : i32
    %c0_i32_1 = arith.constant 0 : i32
    return %arg0, %c0_i32, %c0_i32_0 : i32, i32, i32
  }
  func.func @transform_3(%arg0: i32) -> (i32, i32, i32) {
    %c0_i32 = arith.constant 0 : i32
    %c0_i32_0 = arith.constant 0 : i32
    %c0_i32_1 = arith.constant 0 : i32
    %c0_i32_2 = arith.constant 0 : i32
    return %c0_i32, %c0_i32_0, %c0_i32_1 : i32, i32, i32
  }
  func.func @transform_4(%arg0: i32) -> (i32, i32, i32) {
    %c0_i32 = arith.constant 0 : i32
    %c0_i32_0 = arith.constant 0 : i32
    %c0_i32_1 = arith.constant 0 : i32
    %c0_i32_2 = arith.constant 0 : i32
    return %c0_i32, %c0_i32_0, %c0_i32_1 : i32, i32, i32
  }
  func.func @transform_5(%arg0: i32) -> (i32, i32, i32) {
    %c0_i32 = arith.constant 0 : i32
    %c0_i32_0 = arith.constant 0 : i32
    %c0_i32_1 = arith.constant 0 : i32
    %c0_i32_2 = arith.constant 0 : i32
    return %c0_i32, %c0_i32_0, %c0_i32_1 : i32, i32, i32
  }
  func.func @transform_6(%arg0: i32) -> (i32, i32) {
    %c0_i32 = arith.constant 0 : i32
    %c0_i32_0 = arith.constant 0 : i32
    %c0_i32_1 = arith.constant 0 : i32
    return %c0_i32, %c0_i32_0 : i32, i32
  }
  func.func @transform_7(%arg0: i32) -> (i32, i32) {
    %c0_i32 = arith.constant 0 : i32
    %c0_i32_0 = arith.constant 0 : i32
    %c0_i32_1 = arith.constant 0 : i32
    return %c0_i32, %c0_i32_0 : i32, i32
  }
  func.func @transform_8(%arg0: i32) -> (i32, i32, i32) {
    %c0_i32 = arith.constant 0 : i32
    %c0_i32_0 = arith.constant 0 : i32
    %c0_i32_1 = arith.constant 0 : i32
    return %arg0, %c0_i32, %c0_i32_0 : i32, i32, i32
  }
}

</mosaic_0001>

<bundles_post_ra>
// kernel: dcgru_cell_forward.1
= control target key start
LH: loop header
LB: loop body
LE: loop exit
PB: predicated region body
PF: predicated region fallthrough
CT: control target
= control target key end

     0   :  { %13 = vsyncpa [#allocation3], 0  ;;  %s3235_s0 = inlined_call_operand.vmem [shape: f32[48,16], index: 0, kind: input, shape index: {}]   ;;  %s3236_s1 = inlined_call_operand.vmem [shape: f32[2,16,4], index: 1, kind: input, shape index: {}]   ;;  %s3237_s2 = inlined_call_operand.vmem [shape: f32[2,16,128], index: 2, kind: input, shape index: {}]   ;;  %s3238_s3 = inlined_call_operand.vmem [shape: f32[3,4,384], index: 3, kind: input, shape index: {}]   ;;  %s3239_s4 = inlined_call_operand.vmem [shape: f32[3,128,256], index: 4, kind: input, shape index: {}]   ;;  %s3240_s5 = inlined_call_operand.vmem [shape: f32[3,128,128], index: 5, kind: input, shape index: {}]   ;;  %s3241_s6 = inlined_call_operand.vmem [shape: f32[1,256], index: 6, kind: input, shape index: {}]   ;;  %s3242_s7 = inlined_call_operand.vmem [shape: f32[1,128], index: 7, kind: input, shape index: {}]   ;;  %s3243_s8 = inlined_call_operand.hbm [shape: f32[2,16,128], index: 8, kind: output, shape index: {}]  }
   0x1   :  { %15 = vsyncpa [#allocation3 + $0x1], 0  ;;  %s2509_s27 = smov 0   ;;  %s2511_s28 = smov 0  }
   0x2   :  { %s2513_s29 = smov 0   ;;  %s2515_s30 = smov 0  }
   0x3 LB: > { %s2530_s9 = sadd.s32 4294967295, %s2458_s30   ;;  %s1924_s10 = sadd.s32 4294967294, %s2458_s30   ;;  %s2458_s30 = sphi %s2515_s30, %s3249_s30   ;;  %s2454_s29 = sphi %s2513_s29, %s3248_s29   ;;  %s2450_s28 = sphi %s2511_s28, %s3247_s28   ;;  %s2446_s27 = sphi %s2509_s27, %s3246_s27  }
   0x4   : > { %s2534_s11 = sadd.s32 1, %s2458_s30   ;;  %s206_s12 = sadd.s32 1, %s2454_s29 }
   0x5   : > { %s203_s13 = ssub.s32 %s2458_s30, %s2534_s11  ;;  %p216_p0 = scmp.ne.s32.totalorder %s2454_s29, %s2450_s28 }
   0x6   : > { %p204_p1 = scmp.eq.s32.totalorder %s203_s13, 0  ;;  %p217_p2 = scmp.eq.s32.totalorder %s2530_s9, 1 }
   0x7   : > { %p222_p3 = scmp.ne.s32.totalorder %s2450_s28, %s2446_s27  ;;  %p223_p4 = scmp.eq.s32.totalorder %s1924_s10, 1 }
   0x8   : > { %s2545_s14 = scalar_select %p204_p1, %s2454_s29, %s206_s12  }
   0x9   : > { %p2547_p5 = por %p217_p2, %p216_p0  ;;  %p2551_p6 = por %p223_p4, %p222_p3 }
   0xa   : > { %p1927_p7 = scmp.ge.s32.totalorder %s2458_s30, 1  ;;  %p275_p8 = scmp.lt.s32.totalorder %s2458_s30, 3 }
   0xc   : > { %p276_p9 = pnand %p1927_p7, %p275_p8 }
   0xd   : > { %p314_p10 = scmp.lt.s32.totalorder (!%p276_p9), %s2530_s9, 1  ;;  %s311_s13 = sand.u32 (!%p276_p9), 1, %s2450_s28  }
   0xe   : > { %279 = sbr.rel (%p276_p9) target bundleno = 1008 (0x3f0), region = 52  ;;  %s1928_s17 = sshll.u32 (!%p276_p9), %s311_s13, 4 }
   0xf   : > { %s2080_s18 = sshll.u32 (!%p276_p9), %s2530_s9, 8  ;;  %s313_s19 = scalar_lea.vmem (!%p276_p9), [#allocation2], %s1928_s17 }
  0x10   : > { %s1850_s20 = sshll.u32 (!%p276_p9), %s313_s19, 4  ;;  %s3191_s23 = scalar_lea.hbm (!%p276_p9), %s3243_s8, %s2080_s18  ;;  %s3193_s20 = int_to_ptr.vmem [resolvable:$true] %s1850_s20 }
  0x11   : > { %s2398_s24 = scalar_lea.vmem (!%p276_p9), %s3193_s20, 256 }
  0x12   : > { %p2399_p11 = scmp.ne.s32.totalorder (!%p276_p9), %s3193_s20, %s2398_s24 }
  0x13   : > { %v2561_v0 = vld [vmem:[%s3235_s0] sm:$0xff]  ;;  %vm334_vm0 = vcmask 130048   ;;  %s315_s21 = scalar_select %p314_p10, %s2530_s9, 1  ;;  %v2584_v4 = vld [vmem:[%s3235_s0 + $0x8] sm:$0xff]  ;;  %v2594_v6 = vld [vmem:[%s3235_s0 + $0x10] sm:$0xff]  ;;  %vm590_vm1 = vcmask 1043456  }
  0x14   : > { %2172 = vmatprep.mubr.msk.f32.mxu0 %vm334_vm0, %v2561_v0  ;;  %v2568_v1 = vld [vmem:[%s3235_s0 + $0x20] sm:$0xff]  ;;  %v2589_v5 = vld [vmem:[%s3235_s0 + $0x28] sm:$0xff]  ;;  %v2611_v9 = vld [vmem:[%s3235_s0 + $0x18] sm:$0xff]  ;;  %v2460_v13 = vmov 0.0   ;;  %vm583_vm2 = vcmask 31744   ;;  %s3195_s9 = scalar_lea.sflag [#allocation3], %s311_s13  ;;  %p2400_p12 = pnand %p2399_p11, %p2547_p5 }
  0x15   : > { %2178 = vmatprep.mubr.msk.f32.mxu1 %vm334_vm0, %v2568_v1  ;;  %s2078_s22 = sshll.u32 %s315_s21, 4  ;;  %v1946_v10 = vld [vmem:[%s3238_s3 + $0x14] sm:$0xf]  ;;  %v1945_v11 = vld [vmem:[%s3238_s3 + $0xc] sm:$0xff]  ;;  %v543_v14 = vld [vmem:[%s3238_s3] sm:$0xff] }
  0x16   : > { %s318_s25 = scalar_lea.vmem %s3236_s1, %s2078_s22  ;;  %s2579_s12 = scalar_lea.vmem %s3237_s2, %s2078_s22  ;;  %v582_v12 = vcombine.high %v1945_v11, %v1945_v11  ;;  %v751_v15 = vcombine.high %v543_v14, %v543_v14  ;;  %v544_v16 = vld [vmem:[%s3238_s3 + $0x8] sm:$0xf]  ;;  %v1992_v21 = vld [vmem:[%s3239_s4 + $0x1f8] sm:$0xff]  ;;  %v1991_v23 = vld [vmem:[%s3239_s4 + $0x1f0] sm:$0xff] }
  0x17   : > { %v331_v2 = vld [vmem:[%s318_s25 + $0x8] sm:$0xff]  ;;  %v330_v3 = vld [vmem:[%s318_s25] sm:$0xff]  ;;  %v576_v22 = vld [vmem:[%s3239_s4 + $0xf8] sm:$0xff]  ;;  %p2401_p13 = pneg %p2400_p12 }
  0x18   : > { %2168 = vmatprep.subr.mxu0 %v331_v2  ;;  %2327 = vmatprep.subr.mxu1 %v331_v2  ;;  %v2597_v7 = vld [vmem:[%s2579_s12 + $0x8] sm:$0xff]  ;;  %v2604_v8 = vld [vmem:[%s2579_s12] sm:$0xff]  ;;  %v1988_v26 = vld [vmem:[%s3239_s4 + $0x1d8] sm:$0xff] }
  0x19   : > { %2169 = vmatpush3.msra.mxu0 %v331_v2  ;;  %2329 = vmatpush3.msra.mxu1 %v331_v2  ;;  %v1990_v24 = vld [vmem:[%s3239_s4 + $0x1e8] sm:$0xff]  ;;  %v1989_v25 = vld [vmem:[%s3239_s4 + $0x1e0] sm:$0xff]  ;;  %v575_v27 = vld [vmem:[%s3239_s4 + $0xf0] sm:$0xff] }
  0x1a   : > { %2170 = vmatprep.subr.mxu0 %v330_v3  ;;  %2328 = vmatprep.subr.mxu1 %v330_v3  ;;  %v574_v28 = vld [vmem:[%s3239_s4 + $0xe8] sm:$0xff]  ;;  %v1987_v29 = vld [vmem:[%s3239_s4 + $0x1d0] sm:$0xff]  ;;  %v573_v30 = vld [vmem:[%s3239_s4 + $0xe0] sm:$0xff] }
  0x1b   : > { %2171 = vmatpush3.msra.mxu0 %v330_v3  ;;  %2330 = vmatpush3.msra.mxu1 %v330_v3  ;;  %v1986_v31 = vld [vmem:[%s3239_s4 + $0x1c8] sm:$0xff]  ;;  %v572_v32 = vld [vmem:[%s3239_s4 + $0xd8] sm:$0xff]  ;;  %v1985_v33 = vld [vmem:[%s3239_s4 + $0x1c0] sm:$0xff] }
  0x1c   : > { %2173 = vmatmul.mubr.msk.f32.vlgmr.msra.gmra.mxu0 %vm334_vm0, %v2584_v4  ;;  %2179 = vmatmul.mubr.msk.f32.vlgmr.msra.gmra.mxu1 %vm334_vm0, %v2589_v5  ;;  %v571_v34 = vld [vmem:[%s3239_s4 + $0xd0] sm:$0xff]  ;;  %v1984_v35 = vld [vmem:[%s3239_s4 + $0x1b8] sm:$0xff]  ;;  %v570_v36 = vld [vmem:[%s3239_s4 + $0xc8] sm:$0xff] }
  0x1d   : > { %2175 = vmatprep.mubr.msk.f32.mxu0 %vm334_vm0, %v2594_v6  ;;  %2181 = vmatprep.subr.mxu1 %v2597_v7  ;;  %v1983_v37 = vld [vmem:[%s3239_s4 + $0x1b0] sm:$0xff]  ;;  %v569_v38 = vld [vmem:[%s3239_s4 + $0xc0] sm:$0xff]  ;;  %v1982_v39 = vld [vmem:[%s3239_s4 + $0x1a8] sm:$0xff] }
  0x1e   : > { %2182 = vmatpush3.msra.mxu1 %v2597_v7  ;;  %2185 = vmatprep.mubr.msk.f32.mxu1 %vm334_vm0, %v2561_v0  ;;  %v568_v40 = vld [vmem:[%s3239_s4 + $0xb8] sm:$0xff]  ;;  %v1981_v41 = vld [vmem:[%s3239_s4 + $0x1a0] sm:$0xff]  ;;  %v567_v42 = vld [vmem:[%s3239_s4 + $0xb0] sm:$0xff] }
  0x1f   : > { %2183 = vmatprep.subr.mxu1 %v2604_v8  ;;  %1947 = vmatprep.subr.msk.mxu0 %vm590_vm1, %v582_v12  ;;  %v1980_v43 = vld [vmem:[%s3239_s4 + $0x198] sm:$0xff]  ;;  %v566_v44 = vld [vmem:[%s3239_s4 + $0xa8] sm:$0xff]  ;;  %v1979_v45 = vld [vmem:[%s3239_s4 + $0x190] sm:$0xff] }
  0x20   : > { %2176 = vmatmul.mubr.msk.f32.gmra.mxu0 %vm334_vm0, %v2611_v9  ;;  %2184 = vmatpush3.msra.mxu1 %v2604_v8  ;;  %v565_v46 = vld [vmem:[%s3239_s4 + $0xa0] sm:$0xff]  ;;  %v1978_v47 = vld [vmem:[%s3239_s4 + $0x188] sm:$0xff]  ;;  %v564_v48 = vld [vmem:[%s3239_s4 + $0x98] sm:$0xff] }
  0x21   : > { %2186 = vmatmul.mubr.msk.f32.vlgmr.msra.gmra.mxu1 %vm334_vm0, %v2584_v4  ;;  %2194 = vmatprep.subr.msk.mxu1 %vm590_vm1, %v1946_v10  ;;  %v1977_v50 = vld [vmem:[%s3239_s4 + $0x180] sm:$0xff]  ;;  %v563_v51 = vld [vmem:[%s3239_s4 + $0x90] sm:$0xff]  ;;  %v1976_v52 = vld [vmem:[%s3239_s4 + $0x178] sm:$0xff] }
  0x22   : > { %2188 = vmatprep.mubr.msk.f32.mxu1 %vm334_vm0, %v2594_v6  ;;  %2195 = vmatpush3.msk.msra.mxu1 %vm590_vm1, %v1946_v10  ;;  %v562_v53 = vld [vmem:[%s3239_s4 + $0x88] sm:$0xff]  ;;  %v1975_v54 = vld [vmem:[%s3239_s4 + $0x170] sm:$0xff]  ;;  %v561_v55 = vld [vmem:[%s3239_s4 + $0x80] sm:$0xff] }
  0x23   : > { %1948 = vmatpush1.msk.msra.mxu0 %vm590_vm1, %v1945_v11  ;;  %661 = vmatprep.mubr.f32.mxu0 %v2460_v13  ;;  %v1974_v56 = vld [vmem:[%s3239_s4 + $0x168] sm:$0xff]  ;;  %v560_v57 = vld [vmem:[%s3239_s4 + $0x78] sm:$0xff]  ;;  %v1973_v59 = vld [vmem:[%s3239_s4 + $0x160] sm:$0xff] }
  0x24   : > { %1954 = vmatprep.subr.msk.mxu1 %vm590_vm1, %v751_v15  ;;  %2199 = vmatprep.subr.msk.mxu0 %vm590_vm1, %v544_v16  ;;  %v559_v60 = vld [vmem:[%s3239_s4 + $0x70] sm:$0xff]  ;;  %v1972_v61 = vld [vmem:[%s3239_s4 + $0x158] sm:$0xff]  ;;  %v558_v62 = vld [vmem:[%s3239_s4 + $0x68] sm:$0xff] }
  0x25   : > { %2189 = vmatmul.mubr.msk.f32.gmra.mxu1 %vm334_vm0, %v2611_v9  ;;  %v1971_v63 = vld [vmem:[%s3239_s4 + $0x150] sm:$0xff]  ;;  %v557_v2 = vld [vmem:[%s3239_s4 + $0x60] sm:$0xff]  ;;  %v1970_v3 = vld [vmem:[%s3239_s4 + $0x148] sm:$0xff] }
  0x26   : > { %2191 = vmatprep.mubr.msk.f32.mxu1 %vm334_vm0, %v2568_v1  ;;  %v556_v11 = vld [vmem:[%s3239_s4 + $0x58] sm:$0xff]  ;;  %v1969_v12 = vld [vmem:[%s3239_s4 + $0x140] sm:$0xff] }
  0x27   : > { %v1968_v15 = vld [vmem:[%s3239_s4 + $0x138] sm:$0xff] }
  0x29   : > { %2192 = vmatmul.mubr.msk.f32.gmra.mxu1 %vm334_vm0, %v2589_v5 }
  0xdc   : > { %v2174_v17 = vpop.f32.mrf.mxu0  ;;  %v2747_v49 = vpop.f32.mrf.mxu1 }
  0xde   : > { %v419_v18 = vpop.f32.mrf.mxu0  ;;  %v2773_v58 = vpop.f32.mrf.mxu1 }
  0xe0   : > { %v2177_v19 = vpop.f32.mrf.mxu0 }
  0xe1   : > { %v2796_v10 = vpop.f32.mrf.mxu1 }
  0xe2   : > { %v429_v20 = vpop.f32.mrf.mxu0 }
  0xe3   : > { %1949 = vmatmul.mubr.msk.f32.vlgmr.msra.gmra.mxu0 %vm583_vm2, %v429_v20  ;;  %2196 = vmatprep.mubr.msk.f32.mxu1 %vm583_vm2, %v429_v20  ;;  %v1966_v20 = vld [vmem:[%s3239_s4 + $0x128] sm:$0xff] }
  0xe4   : > { %2197 = vmatmul.mubr.msk.f32.vlgmr.msra.gmra.mxu1 %vm583_vm2, %v2177_v19  ;;  %667 = vmatprep.mubr.f32.mxu0 %v2460_v13 }
  0xe5   : > { %1955 = vmatpush1.msk.msra.mxu1 %vm590_vm1, %v543_v14  ;;  %828 = vmatprep.mubr.f32.mxu1 %v2460_v13  ;;  %v555_v14 = vld [vmem:[%s3239_s4 + $0x50] sm:$0xff] }
  0xe6   : > { %949 = vmatprep.subr.mxu1 %v1992_v21  ;;  %2200 = vmatpush3.msk.msra.mxu0 %vm590_vm1, %v544_v16  ;;  %v554_v16 = vld [vmem:[%s3239_s4 + $0x48] sm:$0xff]  ;;  %v552_v21 = vld [vmem:[%s3239_s4 + $0x38] sm:$0xff] }
  0xe7   : > { %1950 = vmatmul.mubr.msk.f32.gmra.mxu0 %vm583_vm2, %v2177_v19  ;;  %1026 = vmatprep.subr.mxu0 %v576_v22  ;;  %v514_v19 = vpop.f32.mrf.mxu1  ;;  %v1965_v22 = vld [vmem:[%s3239_s4 + $0x120] sm:$0xff] }
  0xe8   : > { %1956 = vmatmul.mubr.msk.f32.vlgmr.msra.gmra.mxu1 %vm583_vm2, %v419_v18  ;;  %2201 = vmatprep.mubr.msk.f32.mxu0 %vm583_vm2, %v419_v18  ;;  %v553_v18 = vld [vmem:[%s3239_s4 + $0x40] sm:$0xff] }
  0xe9   : > { %950 = vmatpush1.msra.mxu1 %v1991_v23  ;;  %834 = vmatprep.mubr.f32.mxu1 %v2460_v13  ;;  %v551_v23 = vld [vmem:[%s3239_s4 + $0x30] sm:$0xff] }
  0xea   : > { %951 = vmatprep.subr.mxu1 %v1990_v24  ;;  %v1964_v24 = vld [vmem:[%s3239_s4 + $0x118] sm:$0xff] }
  0xeb   : > { %952 = vmatpush1.msra.mxu1 %v1989_v25  ;;  %2202 = vmatmul.mubr.msk.f32.vlgmr.msra.gmra.mxu0 %vm583_vm2, %v2174_v17  ;;  %v550_v25 = vld [vmem:[%s3239_s4 + $0x28] sm:$0xff] }
  0xec   : > { %953 = vmatprep.subr.mxu1 %v1988_v26  ;;  %1027 = vmatpush1.msra.mxu0 %v575_v27  ;;  %v1963_v26 = vld [vmem:[%s3239_s4 + $0x110] sm:$0xff]  ;;  %v549_v27 = vld [vmem:[%s3239_s4 + $0x20] sm:$0xff] }
  0xed   : > { %1957 = vmatmul.mubr.msk.f32.gmra.mxu1 %vm583_vm2, %v2174_v17  ;;  %1028 = vmatprep.subr.mxu0 %v574_v28  ;;  %v1967_v17 = vld [vmem:[%s3239_s4 + $0x130] sm:$0xff]  ;;  %v1993_v28 = vld [vmem:[%s3238_s3 + $0x18] sm:$0xff] }
  0xee   : > { %954 = vmatpush1.msra.mxu1 %v1987_v29  ;;  %1029 = vmatpush1.msra.mxu0 %v573_v30  ;;  %v2190_v29 = vpop.f32.mrf.mxu1  ;;  %v1962_v30 = vld [vmem:[%s3239_s4 + $0x108] sm:$0xff] }
  0xef   : > { %955 = vmatprep.subr.mxu1 %v1986_v31  ;;  %1030 = vmatprep.subr.mxu0 %v572_v32  ;;  %v1961_v31 = vld [vmem:[%s3239_s4 + $0x100] sm:$0xff]  ;;  %v548_v32 = vld [vmem:[%s3239_s4 + $0x18] sm:$0xff] }
  0xf0   : > { %956 = vmatpush1.msra.mxu1 %v1985_v33  ;;  %1031 = vmatpush1.msra.mxu0 %v571_v34  ;;  %v547_v33 = vld [vmem:[%s3239_s4 + $0x10] sm:$0xff]  ;;  %v1108_v34 = vcombine.high %v1993_v28, %v1993_v28 }
  0xf1   : > { %957 = vmatprep.subr.mxu1 %v1984_v35  ;;  %1032 = vmatprep.subr.mxu0 %v570_v36  ;;  %v546_v35 = vld [vmem:[%s3239_s4 + $0x8] sm:$0xff]  ;;  %v524_v36 = vpop.f32.mrf.mxu1 }
  0xf2   : > { %958 = vmatpush1.msra.mxu1 %v1983_v37  ;;  %1033 = vmatpush1.msra.mxu0 %v569_v38  ;;  %v545_v37 = vld [vmem:[%s3239_s4] sm:$0xff]  ;;  %v2033_v38 = vld [vmem:[%s3239_s4 + $0x2f8] sm:$0xff] }
  0xf3   : > { %959 = vmatprep.subr.mxu1 %v1982_v39  ;;  %1034 = vmatprep.subr.mxu0 %v568_v40  ;;  %v1994_v39 = vld [vmem:[%s3238_s3 + $0x20] sm:$0xf]  ;;  %v2032_v40 = vld [vmem:[%s3239_s4 + $0x2f0] sm:$0xff] }
  0xf4   : > { %960 = vmatpush1.msra.mxu1 %v1981_v41  ;;  %1035 = vmatpush1.msra.mxu0 %v567_v42  ;;  %v2031_v41 = vld [vmem:[%s3239_s4 + $0x2e8] sm:$0xff]  ;;  %v2030_v42 = vld [vmem:[%s3239_s4 + $0x2e0] sm:$0xff] }
  0xf5   : > { %961 = vmatprep.subr.mxu1 %v1980_v43  ;;  %1036 = vmatprep.subr.mxu0 %v566_v44  ;;  %v2029_v43 = vld [vmem:[%s3239_s4 + $0x2d8] sm:$0xff]  ;;  %v2028_v44 = vld [vmem:[%s3239_s4 + $0x2d0] sm:$0xff] }
  0xf6   : > { %962 = vmatpush1.msra.mxu1 %v1979_v45  ;;  %1037 = vmatpush1.msra.mxu0 %v565_v46  ;;  %v2027_v45 = vld [vmem:[%s3239_s4 + $0x2c8] sm:$0xff]  ;;  %v2026_v46 = vld [vmem:[%s3239_s4 + $0x2c0] sm:$0xff] }
  0xf7   : > { %963 = vmatprep.subr.mxu1 %v1978_v47  ;;  %1038 = vmatprep.subr.mxu0 %v564_v48  ;;  %v2025_v47 = vld [vmem:[%s3239_s4 + $0x2b8] sm:$0xff]  ;;  %v2024_v48 = vld [vmem:[%s3239_s4 + $0x2b0] sm:$0xff] }
  0xf8   : > { %964 = vmatpush1.msra.mxu1 %v1977_v50  ;;  %1039 = vmatpush1.msra.mxu0 %v563_v51  ;;  %v2021_v50 = vld [vmem:[%s3239_s4 + $0x298] sm:$0xff]  ;;  %v2020_v51 = vld [vmem:[%s3239_s4 + $0x290] sm:$0xff] }
  0xf9   : > { %965 = vmatprep.subr.mxu1 %v1976_v52  ;;  %1040 = vmatprep.subr.mxu0 %v562_v53  ;;  %v2019_v52 = vld [vmem:[%s3239_s4 + $0x288] sm:$0xff]  ;;  %v2018_v53 = vld [vmem:[%s3239_s4 + $0x280] sm:$0xff] }
  0xfa   : > { %966 = vmatpush1.msra.mxu1 %v1975_v54  ;;  %1041 = vmatpush1.msra.mxu0 %v561_v55  ;;  %v2017_v54 = vld [vmem:[%s3239_s4 + $0x278] sm:$0xff]  ;;  %v2016_v55 = vld [vmem:[%s3239_s4 + $0x270] sm:$0xff] }
  0xfb   : > { %967 = vmatprep.subr.mxu1 %v1974_v56  ;;  %1042 = vmatprep.subr.mxu0 %v560_v57  ;;  %v2015_v56 = vld [vmem:[%s3239_s4 + $0x268] sm:$0xff]  ;;  %v2014_v57 = vld [vmem:[%s3239_s4 + $0x260] sm:$0xff] }
  0xfc   : > { %968 = vmatpush1.msra.mxu1 %v1973_v59  ;;  %1043 = vmatpush1.msra.mxu0 %v559_v60  ;;  %v2012_v59 = vld [vmem:[%s3239_s4 + $0x250] sm:$0xff]  ;;  %v2011_v60 = vld [vmem:[%s3239_s4 + $0x248] sm:$0xff] }
  0xfd   : > { %969 = vmatprep.subr.mxu1 %v1972_v61  ;;  %1044 = vmatprep.subr.mxu0 %v558_v62  ;;  %v2010_v61 = vld [vmem:[%s3239_s4 + $0x240] sm:$0xff]  ;;  %v2009_v62 = vld [vmem:[%s3239_s4 + $0x238] sm:$0xff] }
  0xfe   : > { %970 = vmatpush1.msra.mxu1 %v1971_v63  ;;  %1045 = vmatpush1.msra.mxu0 %v557_v2  ;;  %v2008_v63 = vld [vmem:[%s3239_s4 + $0x230] sm:$0xff]  ;;  %v2007_v2 = vld [vmem:[%s3239_s4 + $0x228] sm:$0xff] }
  0xff   : > { %971 = vmatprep.subr.mxu1 %v1970_v3  ;;  %1046 = vmatprep.subr.mxu0 %v556_v11  ;;  %v2006_v3 = vld [vmem:[%s3239_s4 + $0x220] sm:$0xff]  ;;  %v2004_v11 = vld [vmem:[%s3239_s4 + $0x210] sm:$0xff] }
 0x100   : > { %972 = vmatpush1.msra.mxu1 %v1969_v12  ;;  %1047 = vmatpush1.msra.mxu0 %v555_v14  ;;  %v2193_v12 = vpop.f32.mrf.mxu1  ;;  %v2003_v14 = vld [vmem:[%s3239_s4 + $0x208] sm:$0xff] }
 0x101   : > { %973 = vmatprep.subr.mxu1 %v1968_v15  ;;  %1048 = vmatprep.subr.mxu0 %v554_v16  ;;  %v2002_v15 = vld [vmem:[%s3239_s4 + $0x200] sm:$0xff] }
 0x102   : > { %974 = vmatpush1.msra.mxu1 %v1967_v17  ;;  %1049 = vmatpush1.msra.mxu0 %v553_v18  ;;  %v534_v16 = vpop.f32.mrf.mxu1  ;;  %v1399_v17 = vlaneseq }
 0x103   : > { %975 = vmatprep.subr.mxu1 %v1966_v20  ;;  %1050 = vmatprep.subr.mxu0 %v552_v21  ;;  %v2992_v20 = vld [vmem:[%s3241_s6] sm:$0x3] }
 0x104   : > { %976 = vmatpush1.msra.mxu1 %v1965_v22  ;;  %1051 = vmatpush1.msra.mxu0 %v551_v23  ;;  %v2986_v18 = vshrl.u32 %v1399_v17, 7 }
 0x105   : > { %977 = vmatprep.subr.mxu1 %v1964_v24  ;;  %1052 = vmatprep.subr.mxu0 %v550_v25 }
 0x106   : > { %978 = vmatpush1.msra.mxu1 %v1963_v26  ;;  %1053 = vmatpush1.msra.mxu0 %v549_v27 }
 0x107   : > { %979 = vmatprep.subr.mxu1 %v1962_v30  ;;  %1013 = vmatprep.mubr.f32.mxu1 %v2460_v13 }
 0x108   : > { %980 = vmatpush1.msra.mxu1 %v1961_v31  ;;  %1054 = vmatprep.subr.mxu0 %v548_v32 }
 0x109   : > { %1014 = vmatmul.mubr.f32.vlgmr.msra.gmra.mxu1 %v524_v36  ;;  %1055 = vmatpush1.msra.mxu0 %v547_v33  ;;  %v2056_v36 = vld [vmem:[%s3240_s5 + $0xf8] sm:$0xff] }
 0x10a   : > { %1995 = vmatprep.subr.msk.mxu1 %vm590_vm1, %v1108_v34  ;;  %1056 = vmatprep.subr.mxu0 %v546_v35 }
 0x10b   : > { %1996 = vmatpush1.msk.msra.mxu1 %vm590_vm1, %v1993_v28  ;;  %1057 = vmatpush1.msra.mxu0 %v545_v37  ;;  %v2055_v37 = vld [vmem:[%s3240_s5 + $0xf0] sm:$0xff] }
 0x10c   : > { %1090 = vmatprep.mubr.f32.mxu0 %v2460_v13  ;;  %1019 = vmatprep.mubr.f32.mxu1 %v2460_v13 }
 0x10d   : > { %1091 = vmatmul.mubr.f32.vlgmr.msra.gmra.mxu0 %v514_v19  ;;  %1020 = vmatmul.mubr.f32.gmra.mxu1 %v2190_v29  ;;  %v1401_v19 = vsub.s32 0, %v2986_v18 }
 0x10e   : > { %1096 = vmatprep.mubr.f32.mxu0 %v2460_v13  ;;  %1185 = vmatprep.mubr.f32.mxu1 %v2460_v13 }
 0x10f   : > { %1312 = vmatprep.subr.mxu1 %v2033_v38  ;;  %2204 = vmatprep.subr.msk.mxu0 %vm590_vm1, %v1994_v39  ;;  %v2995_v21 = vrot.slane %v2992_v20, %v1401_v19  ;;  %v2054_v38 = vld [vmem:[%s3240_s5 + $0xe8] sm:$0xff] }
 0x110   : > { %2205 = vmatpush3.msk.msra.mxu0 %vm590_vm1, %v1994_v39  ;;  %v2053_v39 = vld [vmem:[%s3240_s5 + $0xe0] sm:$0xff] }
 0x111   : > { %1097 = vmatmul.mubr.f32.gmra.mxu0 %v2796_v10  ;;  %1997 = vmatmul.mubr.msk.f32.vlgmr.msra.gmra.mxu1 %vm583_vm2, %v2773_v58  ;;  %v2005_v10 = vld [vmem:[%s3239_s4 + $0x218] sm:$0xff] }
 0x112   : > { %2206 = vmatprep.mubr.msk.f32.mxu0 %vm583_vm2, %v2773_v58  ;;  %1313 = vmatpush1.msra.mxu1 %v2032_v40  ;;  %v2013_v58 = vld [vmem:[%s3239_s4 + $0x258] sm:$0xff] }
 0x113   : > { %1314 = vmatprep.subr.mxu1 %v2031_v41  ;;  %1191 = vmatprep.mubr.f32.mxu1 %v2460_v13  ;;  %v2052_v40 = vld [vmem:[%s3240_s5 + $0xd8] sm:$0xff]  ;;  %v2051_v41 = vld [vmem:[%s3240_s5 + $0xd0] sm:$0xff] }
 0x114   : > { %1315 = vmatpush1.msra.mxu1 %v2030_v42  ;;  %v2050_v42 = vld [vmem:[%s3240_s5 + $0xc8] sm:$0xff] }
 0x115   : > { %2207 = vmatmul.mubr.msk.f32.vlgmr.msra.gmra.mxu0 %vm583_vm2, %v2747_v49  ;;  %1316 = vmatprep.subr.mxu1 %v2029_v43  ;;  %v2049_v43 = vld [vmem:[%s3240_s5 + $0xc0] sm:$0xff] }
 0x116   : > { %1998 = vmatmul.mubr.msk.f32.gmra.mxu1 %vm583_vm2, %v2747_v49  ;;  %2213 = vmatprep.mubr.msk.f32.mxu0 %vm334_vm0, %v2561_v0  ;;  %v2023_v49 = vld [vmem:[%s3239_s4 + $0x2a8] sm:$0xff]  ;;  %v2022_v0 = vld [vmem:[%s3239_s4 + $0x2a0] sm:$0xff] }
 0x117   : > { %1317 = vmatpush1.msra.mxu1 %v2028_v44  ;;  %1376 = vmatprep.mubr.f32.mxu1 %v2460_v13  ;;  %v2048_v44 = vld [vmem:[%s3240_s5 + $0xb8] sm:$0xff] }
 0x118   : > { %1318 = vmatprep.subr.mxu1 %v2027_v45  ;;  %v2047_v45 = vld [vmem:[%s3240_s5 + $0xb0] sm:$0xff] }
 0x119   : > { %1319 = vmatpush1.msra.mxu1 %v2026_v46  ;;  %v2046_v46 = vld [vmem:[%s3240_s5 + $0xa8] sm:$0xff] }
 0x11a   : > { %1320 = vmatprep.subr.mxu1 %v2025_v47  ;;  %v2045_v47 = vld [vmem:[%s3240_s5 + $0xa0] sm:$0xff] }
 0x11b   : > { %1321 = vmatpush1.msra.mxu1 %v2024_v48 }
 0x11c   : > { %1322 = vmatprep.subr.mxu1 %v2023_v49 }
 0x11d   : > { %1323 = vmatpush1.msra.mxu1 %v2022_v0 }
 0x11e   : > { %1324 = vmatprep.subr.mxu1 %v2021_v50 }
 0x11f   : > { %1325 = vmatpush1.msra.mxu1 %v2020_v51 }
 0x120   : > { %1326 = vmatprep.subr.mxu1 %v2019_v52 }
 0x121   : > { %1327 = vmatpush1.msra.mxu1 %v2018_v53 }
 0x122   : > { %1328 = vmatprep.subr.mxu1 %v2017_v54 }
 0x123   : > { %1329 = vmatpush1.msra.mxu1 %v2016_v55 }
 0x124   : > { %1330 = vmatprep.subr.mxu1 %v2015_v56 }
 0x125   : > { %1331 = vmatpush1.msra.mxu1 %v2014_v57 }
 0x126   : > { %1332 = vmatprep.subr.mxu1 %v2013_v58 }
 0x127   : > { %1333 = vmatpush1.msra.mxu1 %v2012_v59 }
 0x128   : > { %1334 = vmatprep.subr.mxu1 %v2011_v60 }
 0x129   : > { %1335 = vmatpush1.msra.mxu1 %v2010_v61 }
 0x12a   : > { %1336 = vmatprep.subr.mxu1 %v2009_v62 }
 0x12b   : > { %1337 = vmatpush1.msra.mxu1 %v2008_v63 }
 0x12c   : > { %1338 = vmatprep.subr.mxu1 %v2007_v2 }
 0x12d   : > { %1339 = vmatpush1.msra.mxu1 %v2006_v3 }
 0x12e   : > { %1340 = vmatprep.subr.mxu1 %v2005_v10  ;;  %v1405_v10 = vsub.s32 1, %v2986_v18 }
 0x12f   : > { %1341 = vmatpush1.msra.mxu1 %v2004_v11 }
 0x130   : > { %1342 = vmatprep.subr.mxu1 %v2003_v14 }
 0x131   : > { %1343 = vmatpush1.msra.mxu1 %v2002_v15 }
 0x132   : > { %1377 = vmatmul.mubr.f32.vlgmr.msra.gmra.mxu1 %v534_v16  ;;  %2257 = vmatprep.subr.mxu1 %v2056_v36 }
 0x133   : > { %1382 = vmatprep.mubr.f32.mxu1 %v2460_v13  ;;  %2258 = vmatpush3.msra.mxu1 %v2056_v36 }
 0x134   : > { %2259 = vmatprep.subr.mxu1 %v2055_v37 }
 0x135   : > { %2260 = vmatpush3.msra.mxu1 %v2055_v37 }
 0x136   : > { %1383 = vmatmul.mubr.f32.gmra.mxu1 %v2193_v12  ;;  %2261 = vmatprep.subr.mxu1 %v2054_v38 }
 0x137   : > { %2262 = vmatpush3.msra.mxu1 %v2054_v38 }
 0x138   : > { %2263 = vmatprep.subr.mxu1 %v2053_v39 }
 0x139   : > { %2264 = vmatpush3.msra.mxu1 %v2053_v39 }
 0x13a   : > { %2265 = vmatprep.subr.mxu1 %v2052_v40 }
 0x13b   : > { %2266 = vmatpush3.msra.mxu1 %v2052_v40 }
 0x13c   : > { %2267 = vmatprep.subr.mxu1 %v2051_v41 }
 0x13d   : > { %2268 = vmatpush3.msra.mxu1 %v2051_v41 }
 0x13e   : > { %2269 = vmatprep.subr.mxu1 %v2050_v42 }
 0x13f   : > { %2270 = vmatpush3.msra.mxu1 %v2050_v42 }
 0x140   : > { %2271 = vmatprep.subr.mxu1 %v2049_v43 }
 0x141   : > { %2272 = vmatpush3.msra.mxu1 %v2049_v43 }
 0x142   : > { %2273 = vmatprep.subr.mxu1 %v2048_v44 }
 0x143   : > { %2274 = vmatpush3.msra.mxu1 %v2048_v44 }
 0x144   : > { %2275 = vmatprep.subr.mxu1 %v2047_v45 }
 0x145   : > { %2276 = vmatpush3.msra.mxu1 %v2047_v45 }
 0x146   : > { %2277 = vmatprep.subr.mxu1 %v2046_v46 }
 0x147   : > { %2278 = vmatpush3.msra.mxu1 %v2046_v46 }
 0x148   : > { %2279 = vmatprep.subr.mxu1 %v2045_v47 }
 0x149   : > { %2280 = vmatpush3.msra.mxu1 %v2045_v47  ;;  %v1558_v47 = vld [vmem:[%s3240_s5 + $0x78] sm:$0xff] }
 0x1a3   : > { %v663_v22 = vpop.f32.mrf.mxu0 }
 0x1a4   : > { %v2198_v23 = vpop.f32.mrf.mxu1 }
 0x1a5   : > { %v2997_v24 = vpop.f32.mrf.mxu0 }
 0x1a6   : > { %v740_v25 = vpop.f32.mrf.mxu1 }
 0x1a7   : > { %v669_v13 = vpop.f32.mrf.mxu0 }
 0x1a8   : > { %v830_v26 = vpop.f32.mrf.mxu1 }
 0x1a9   : > { %v831_v27 = vadd.f32 %v830_v26, %v663_v22  ;;  %v2999_v28 = vpop.f32.mrf.mxu0 }
 0x1aa   : > { %v3001_v29 = vpop.f32.mrf.mxu1 }
 0x1ab   : > { %v2203_v30 = vpop.f32.mrf.mxu0  ;;  %v833_v12 = vadd.f32 %v3001_v29, %v2997_v24 }
 0x1ac   : > { %v913_v31 = vadd.f32 %v2203_v30, %v2198_v23  ;;  %v1406_v23 = vrot.slane %v2992_v20, %v1405_v10  ;;  %v2070_v10 = vld [vmem:[%s3240_s5 + $0x168] sm:$0xff] }
 0x1ad   : > { %v836_v32 = vpop.f32.mrf.mxu1  ;;  %v907_v33 = vpop.f32.mrf.mxu0 }
 0x1ae   : > { %v837_v34 = vadd.f32 %v836_v32, %v669_v13  ;;  %v3003_v35 = vadd.f32 %v907_v33, %v740_v25 }
 0x1af   : > { %v838_v48 = vpop.f32.mrf.mxu1 }
 0x1b0   : > { %v839_v25 = vadd.f32 %v838_v48, %v2999_v28  ;;  %v1557_v48 = vld [vmem:[%s3240_s5 + $0x70] sm:$0xff] }
 0x1c9   : > { %v1015_v49 = vpop.f32.mrf.mxu1 }
 0x1cb   : > { %v1017_v0 = vpop.f32.mrf.mxu1 }
 0x1cd   : > { %v1092_v50 = vpop.f32.mrf.mxu0  ;;  %v1021_v51 = vpop.f32.mrf.mxu1 }
 0x1ce   : > { %v1093_v52 = vadd.f32 %v1092_v50, %v1015_v49  ;;  %v1550_v49 = vld [vmem:[%s3240_s5 + $0x38] sm:$0xff]  ;;  %v1547_v50 = vld [vmem:[%s3240_s5 + $0x20] sm:$0xff] }
 0x1cf   : > { %v1094_v53 = vpop.f32.mrf.mxu0  ;;  %v1023_v54 = vpop.f32.mrf.mxu1 }
 0x1d0   : > { %v1095_v14 = vadd.f32 %v1094_v53, %v1017_v0  ;;  %v1548_v0 = vld [vmem:[%s3240_s5 + $0x28] sm:$0xff] }
 0x1d1   : > { %v1098_v55 = vpop.f32.mrf.mxu0  ;;  %v1187_v56 = vpop.f32.mrf.mxu1  ;;  %v1544_v53 = vld [vmem:[%s3240_s5 + $0x8] sm:$0xff] }
 0x1d2   : > { %v1099_v57 = vadd.f32 %v1098_v55, %v1021_v51  ;;  %v1273_v58 = vadd.f32 %v1187_v56, %v831_v27  ;;  %v1546_v51 = vld [vmem:[%s3240_s5 + $0x18] sm:$0xff]  ;;  %v1543_v55 = vld [vmem:[%s3240_s5] sm:$0xff]  ;;  %v2043_v56 = vld [vmem:[%s3240_s5 + $0x90] sm:$0xff] }
 0x1d3   : > { %v1100_v59 = vpop.f32.mrf.mxu0  ;;  %v1189_v60 = vpop.f32.mrf.mxu1 }
 0x1d4   : > { %v1274_v17 = vadd.f32 %v1189_v60, %v833_v12  ;;  %v1101_v26 = vadd.f32 %v1100_v59, %v1023_v54  ;;  %v2044_v54 = vld [vmem:[%s3240_s5 + $0x98] sm:$0xff]  ;;  %v2041_v59 = vld [vmem:[%s3240_s5 + $0x80] sm:$0xff] }
 0x1d5   : > { %v2208_v61 = vpop.f32.mrf.mxu0  ;;  %2281 = vmatprep.subr.mxu1 %v2044_v54  ;;  %v2069_v12 = vld [vmem:[%s3240_s5 + $0x160] sm:$0xff] }
 0x1d6   : > { %v3041_v62 = vadd.f32 %v2208_v61, %v913_v31  ;;  %v1193_v63 = vpop.f32.mrf.mxu1  ;;  %2282 = vmatpush3.msra.mxu1 %v2044_v54 }
 0x1d7   : > { %v1276_v2 = vadd.f32 %v1193_v63, %v837_v34  ;;  %2283 = vmatprep.subr.mxu1 %v2043_v56  ;;  %v3129_v60 = vpop.f32.mrf.mxu0 }
 0x1d8   : > { %v1195_v3 = vpop.f32.mrf.mxu1  ;;  %2284 = vmatpush3.msra.mxu1 %v2043_v56 }
 0x1d9   : > { %v1277_v32 = vadd.f32 %v1195_v3, %v839_v25  ;;  %v2063_v25 = vld [vmem:[%s3240_s5 + $0x130] sm:$0xff] }
 0x1f2   : > { %v1378_v11 = vpop.f32.mrf.mxu1 }
 0x1f3   : > { %v1389_v15 = vadd.f32 %v1378_v11, %v1093_v52  ;;  %v1545_v52 = vld [vmem:[%s3240_s5 + $0x10] sm:$0xff] }
 0x1f4   : > { %v1380_v16 = vpop.f32.mrf.mxu1 }
 0x1f5   : > { %v1393_v19 = vadd.f32 %v1389_v15, %v1273_v58  ;;  %v1390_v22 = vadd.f32 %v1380_v16, %v1095_v14  ;;  %v2042_v58 = vld [vmem:[%s3240_s5 + $0x88] sm:$0xff]  ;;  %v2068_v15 = vld [vmem:[%s3240_s5 + $0x158] sm:$0xff] }
 0x1f6   : > { %v1384_v13 = vpop.f32.mrf.mxu1  ;;  %2285 = vmatprep.subr.mxu1 %v2042_v58 }
 0x1f7   : > { %v3049_v27 = vadd.f32 %v2995_v21, %v1393_v19  ;;  %v1394_v18 = vadd.f32 %v1390_v22, %v1274_v17  ;;  %v1391_v30 = vadd.f32 %v1384_v13, %v1099_v57  ;;  %v2072_v57 = vld [vmem:[%s3240_s5 + $0x178] sm:$0xff]  ;;  %2286 = vmatpush3.msra.mxu1 %v2042_v58  ;;  %v2067_v17 = vld [vmem:[%s3240_s5 + $0x150] sm:$0xff]  ;;  %v2066_v19 = vld [vmem:[%s3240_s5 + $0x148] sm:$0xff] }
 0x1f8   : > { %v1386_v31 = vpop.f32.mrf.mxu1  ;;  %2287 = vmatprep.subr.mxu1 %v2041_v59  ;;  %v2065_v22 = vld [vmem:[%s3240_s5 + $0x140] sm:$0xff]  ;;  %v2062_v13 = vld [vmem:[%s3240_s5 + $0x128] sm:$0xff] }
 0x1f9   : > { %v1410_v24 = vadd.f32 %v1406_v23, %v1394_v18  ;;  %v1395_v29 = vadd.f32 %v1391_v30, %v1276_v2  ;;  %v1392_v33 = vadd.f32 %v1386_v31, %v1101_v26  ;;  %2288 = vmatpush3.msra.mxu1 %v2041_v59  ;;  %v2071_v2 = vld [vmem:[%s3240_s5 + $0x170] sm:$0xff]  ;;  %v2061_v26 = vld [vmem:[%s3240_s5 + $0x120] sm:$0xff]  ;;  %v2060_v18 = vld [vmem:[%s3240_s5 + $0x118] sm:$0xff] }
 0x1fa   : > { %v2059_v30 = vld [vmem:[%s3240_s5 + $0x110] sm:$0xff]  ;;  %v2058_v31 = vld [vmem:[%s3240_s5 + $0x108] sm:$0xff] }
 0x1fb   : > { %v1425_v34 = vsub.f32 0.0, %v1410_v24  ;;  %v3052_v36 = vadd.f32 %v2995_v21, %v1395_v29  ;;  %v1396_v37 = vadd.f32 %v1392_v33, %v1277_v32  ;;  %v2057_v32 = vld [vmem:[%s3240_s5 + $0x100] sm:$0xff]  ;;  %v1413_v29 = vsub.f32 0.0, %v3049_v27 }
 0x1fd   : > { %v1427_v20 = vmul.f32 1.442695, %v1425_v34  ;;  %v1412_v38 = vadd.f32 %v1406_v23, %v1396_v37  ;;  %v2064_v23 = vld [vmem:[%s3240_s5 + $0x138] sm:$0xff]  ;;  %v1414_v24 = vsub.f32 0.0, %v3052_v36  ;;  %v1415_v34 = vmul.f32 1.442695, %v1413_v29 }
 0x1ff   : > { %2376 = vpow2.f32 %v1427_v20  ;;  %v1426_v28 = vsub.f32 0.0, %v1412_v38  ;;  %v1417_v33 = vmul.f32 1.442695, %v1414_v24  ;;  %v2040_v38 = vld [vmem:[%s3242_s7] ss:$0 sm:$0xff] }
 0x200   : > { %v1542_v36 = vadd.f32 %v2040_v38, %v3041_v62 }
 0x201   : > { %v1429_v39 = vmul.f32 1.442695, %v1426_v28 }
 0x203   : > { %2378 = vpow2.f32 %v1429_v39  ;;  %v1275_v39 = vadd.f32 %v3129_v60, %v3003_v35 }
 0x20c   : > { %v2377_v40 = vpop.eup %2376 }
 0x20d   : > { %v1431_v41 = vadd.f32 1.0, %v2377_v40 }
 0x20f   : > { %2380 = vrcp.f32 %v1431_v41 }
 0x210   : > { %v2379_v42 = vpop.eup %2378 }
 0x211   : > { %v1432_v43 = vadd.f32 1.0, %v2379_v42 }
 0x213   : > { %2382 = vrcp.f32 %v1432_v43 }
 0x214   : > { %2384 = vpow2.f32 %v1417_v33 }
 0x215   : > { %2386 = vpow2.f32 %v1415_v34 }
 0x21c   : > { %v2381_v44 = vpop.eup %2380 }
 0x21d   : > { %v1437_v21 = vmul.f32 %v2381_v44, %v2604_v8  ;;  %v1555_v8 = vld [vmem:[%s3240_s5 + $0x60] sm:$0xff]  ;;  %v1541_v44 = vadd.f32 %v2040_v38, %v1275_v39 }
 0x220   : > { %v2383_v45 = vpop.eup %2382 }
 0x221   : > { %v1438_v46 = vmul.f32 %v2383_v45, %v2597_v7  ;;  %v1556_v7 = vld [vmem:[%s3240_s5 + $0x68] sm:$0xff]  ;;  %v2385_v37 = vpop.eup %2384 }
 0x222   : > { %v2387_v20 = vpop.eup %2386  ;;  %v1420_v40 = vadd.f32 1.0, %v2385_v37 }
 0x223   : > { %2209 = vmatprep.subr.mxu0 %v1438_v46  ;;  %v1419_v42 = vadd.f32 1.0, %v2387_v20 }
 0x224   : > { %2210 = vmatpush3.msra.mxu0 %v1438_v46  ;;  %2388 = vrcp.f32 %v1420_v40 }
 0x225   : > { %2211 = vmatprep.subr.mxu0 %v1437_v21  ;;  %2390 = vrcp.f32 %v1419_v42 }
 0x226   : > { %2212 = vmatpush3.msra.mxu0 %v1437_v21 }
 0x227   : > { %2214 = vmatmul.mubr.msk.f32.vlgmr.msra.gmra.mxu0 %vm334_vm0, %v2584_v4  ;;  %2222 = vmatprep.subr.mxu0 %v1558_v47  ;;  %v1554_v4 = vld [vmem:[%s3240_s5 + $0x58] sm:$0xff] }
 0x228   : > { %2216 = vmatprep.mubr.msk.f32.mxu0 %vm334_vm0, %v2594_v6  ;;  %2223 = vmatpush3.msra.mxu0 %v1558_v47  ;;  %v1553_v6 = vld [vmem:[%s3240_s5 + $0x50] sm:$0xff] }
 0x229   : > { %2224 = vmatprep.subr.mxu0 %v1557_v48 }
 0x22a   : > { %2225 = vmatpush3.msra.mxu0 %v1557_v48 }
 0x22b   : > { %2217 = vmatmul.mubr.msk.f32.gmra.mxu0 %vm334_vm0, %v2611_v9  ;;  %2226 = vmatprep.subr.mxu0 %v1556_v7  ;;  %v1551_v9 = vld [vmem:[%s3240_s5 + $0x40] sm:$0xff] }
 0x22c   : > { %2219 = vmatprep.mubr.msk.f32.mxu0 %vm334_vm0, %v2568_v1  ;;  %2227 = vmatpush3.msra.mxu0 %v1556_v7  ;;  %v1552_v1 = vld [vmem:[%s3240_s5 + $0x48] sm:$0xff] }
 0x22d   : > { %2228 = vmatprep.subr.mxu0 %v1555_v8 }
 0x22e   : > { %2229 = vmatpush3.msra.mxu0 %v1555_v8 }
 0x22f   : > { %2220 = vmatmul.mubr.msk.f32.gmra.mxu0 %vm334_vm0, %v2589_v5  ;;  %2230 = vmatprep.subr.mxu0 %v1554_v4  ;;  %v1549_v5 = vld [vmem:[%s3240_s5 + $0x30] sm:$0xff] }
 0x230   : > { %2231 = vmatpush3.msra.mxu0 %v1554_v4 }
 0x231   : > { %2232 = vmatprep.subr.mxu0 %v1553_v6  ;;  %v2389_v62 = vpop.eup %2388 }
 0x232   : > { %2233 = vmatpush3.msra.mxu0 %v1553_v6  ;;  %v2391_v4 = vpop.eup %2390  ;;  %v1827_v6 = vsub.f32 1.0, %v2389_v62 }
 0x233   : > { %2234 = vmatprep.subr.mxu0 %v1552_v1 }
 0x234   : > { %2235 = vmatpush3.msra.mxu0 %v1552_v1  ;;  %v1826_v1 = vsub.f32 1.0, %v2391_v4 }
 0x235   : > { %2236 = vmatprep.subr.mxu0 %v1551_v9 }
 0x236   : > { %2237 = vmatpush3.msra.mxu0 %v1551_v9 }
 0x237   : > { %2238 = vmatprep.subr.mxu0 %v1550_v49 }
 0x238   : > { %2239 = vmatpush3.msra.mxu0 %v1550_v49 }
 0x239   : > { %2240 = vmatprep.subr.mxu0 %v1549_v5 }
 0x23a   : > { %2241 = vmatpush3.msra.mxu0 %v1549_v5  ;;  %v2396_v5 = vld [vmem:[%s2579_s12 + $0x8] sm:$0xff] }
 0x23b   : > { %2242 = vmatprep.subr.mxu0 %v1548_v0 }
 0x23c   : > { %2243 = vmatpush3.msra.mxu0 %v1548_v0  ;;  %v1829_v0 = vmul.f32 %v2396_v5, %v1827_v6 }
 0x23d   : > { %2244 = vmatprep.subr.mxu0 %v1547_v50 }
 0x23e   : > { %2245 = vmatpush3.msra.mxu0 %v1547_v50 }
 0x23f   : > { %2246 = vmatprep.subr.mxu0 %v1546_v51 }
 0x240   : > { %2247 = vmatpush3.msra.mxu0 %v1546_v51 }
 0x241   : > { %2248 = vmatprep.subr.mxu0 %v1545_v52 }
 0x242   : > { %2249 = vmatpush3.msra.mxu0 %v1545_v52  ;;  %v2397_v52 = vld [vmem:[%s2579_s12] sm:$0xff]  ;;  %s2461_s12 = smov [#allocation2]  }
 0x243   : > { %2250 = vmatprep.subr.mxu0 %v1544_v53  ;;  %s2402_s25 = sshll.u32 %s2461_s12, 4  ;;  %s2403_s25 = int_to_ptr.vmem [resolvable:$false] %s2402_s25 }
 0x244   : > { %2251 = vmatpush3.msra.mxu0 %v1544_v53  ;;  %v1828_v53 = vmul.f32 %v2397_v52, %v1826_v1  ;;  %s2404_s26 = scalar_lea.vmem %s2403_s25, 512  ;;  %p2405_p0 = scmp.lt.s32.totalorder %s3193_s20, %s2403_s25 }
 0x245   : > { %2252 = vmatprep.subr.mxu0 %v1543_v55  ;;  %p2406_p1 = scmp.lt.s32.totalorder %s2404_s26, %s2398_s24 }
 0x246   : > { %2253 = vmatpush3.msra.mxu0 %v1543_v55 }
 0x247   : > { %2292 = vmatprep.subr.mxu0 %v2072_v57  ;;  %p2407_p2 = por %p2406_p1, %p2405_p0 }
 0x249   : > { %p2408_p3 = pnand %p2407_p2, %p2401_p13 }
 0x2e7   : > { %v2215_v61 = vpop.f32.mrf.mxu0 }
 0x2e9   : > { %v1505_v63 = vpop.f32.mrf.mxu0 }
 0x2ea   : > { %2254 = vmatprep.mubr.f32.mxu0 %v1505_v63 }
 0x2eb   : > { %v2218_v3 = vpop.f32.mrf.mxu0  ;;  %2255 = vmatmul.mubr.f32.vlgmr.msra.gmra.mxu0 %v2215_v61 }
 0x2ec   : > { %2293 = vmatpush3.msra.mxu0 %v2072_v57 }
 0x2ed   : > { %2294 = vmatprep.subr.mxu0 %v2071_v2  ;;  %v1515_v11 = vpop.f32.mrf.mxu0 }
 0x2ee   : > { %2295 = vmatpush3.msra.mxu0 %v2071_v2  ;;  %2289 = vmatprep.mubr.f32.mxu1 %v1515_v11 }
 0x2ef   : > { %2296 = vmatprep.subr.mxu0 %v2070_v10  ;;  %2290 = vmatmul.mubr.f32.vlgmr.msra.gmra.mxu1 %v2218_v3  ;;  %v2221_v14 = vpop.f32.mrf.mxu0 }
 0x2f0   : > { %2297 = vmatpush3.msra.mxu0 %v2070_v10 }
 0x2f1   : > { %2298 = vmatprep.subr.mxu0 %v2069_v12  ;;  %v1525_v16 = vpop.f32.mrf.mxu0 }
 0x2f2   : > { %2299 = vmatpush3.msra.mxu0 %v2069_v12  ;;  %2324 = vmatprep.mubr.f32.mxu0 %v1525_v16 }
 0x2f3   : > { %2300 = vmatprep.subr.mxu0 %v2068_v15 }
 0x2f4   : > { %2301 = vmatpush3.msra.mxu0 %v2068_v15 }
 0x2f5   : > { %2302 = vmatprep.subr.mxu0 %v2067_v17 }
 0x2f6   : > { %2303 = vmatpush3.msra.mxu0 %v2067_v17 }
 0x2f7   : > { %2304 = vmatprep.subr.mxu0 %v2066_v19 }
 0x2f8   : > { %2305 = vmatpush3.msra.mxu0 %v2066_v19 }
 0x2f9   : > { %2306 = vmatprep.subr.mxu0 %v2065_v22 }
 0x2fa   : > { %2307 = vmatpush3.msra.mxu0 %v2065_v22 }
 0x2fb   : > { %2308 = vmatprep.subr.mxu0 %v2064_v23 }
 0x2fc   : > { %2309 = vmatpush3.msra.mxu0 %v2064_v23 }
 0x2fd   : > { %2310 = vmatprep.subr.mxu0 %v2063_v25 }
 0x2fe   : > { %2311 = vmatpush3.msra.mxu0 %v2063_v25 }
 0x2ff   : > { %2312 = vmatprep.subr.mxu0 %v2062_v13 }
 0x300   : > { %2313 = vmatpush3.msra.mxu0 %v2062_v13 }
 0x301   : > { %2314 = vmatprep.subr.mxu0 %v2061_v26 }
 0x302   : > { %2315 = vmatpush3.msra.mxu0 %v2061_v26 }
 0x303   : > { %2316 = vmatprep.subr.mxu0 %v2060_v18 }
 0x304   : > { %2317 = vmatpush3.msra.mxu0 %v2060_v18 }
 0x305   : > { %2318 = vmatprep.subr.mxu0 %v2059_v30 }
 0x306   : > { %2319 = vmatpush3.msra.mxu0 %v2059_v30 }
 0x307   : > { %2320 = vmatprep.subr.mxu0 %v2058_v31 }
 0x308   : > { %2321 = vmatpush3.msra.mxu0 %v2058_v31 }
 0x309   : > { %2322 = vmatprep.subr.mxu0 %v2057_v32 }
 0x30a   : > { %2323 = vmatpush3.msra.mxu0 %v2057_v32 }
 0x30b   : > { %2325 = vmatmul.mubr.f32.vlgmr.msra.gmra.mxu0 %v2221_v14 }
 0x3ab   : > { %v2256_v28 = vpop.f32.mrf.mxu0 }
 0x3ac   : > { %v1635_v43 = vadd.f32 %v2256_v28, %v1542_v36 }
 0x3ad   : > { %v1625_v27 = vpop.f32.mrf.mxu0 }
 0x3ae   : > { %v1634_v46 = vadd.f32 %v1625_v27, %v1541_v44 }
 0x3af   : > { %v2291_v41 = vpop.f32.mrf.mxu1 }
 0x3b0   : > { %v1729_v21 = vadd.f32 %v2291_v41, %v1635_v43 }
 0x3b1   : > { %v1719_v45 = vpop.f32.mrf.mxu1 }
 0x3b2   : > { %v1728_v48 = vadd.f32 %v1719_v45, %v1634_v46 }
 0x3cb   : > { %v2326_v47 = vpop.f32.mrf.mxu0 }
 0x3cc   : > { %v1823_v7 = vadd.f32 %v2326_v47, %v1729_v21 }
 0x3cd   : > { %v1813_v35 = vpop.f32.mrf.mxu0 }
 0x3ce   : > { %2392 = vtanh.f32 %v1823_v7  ;;  %v1822_v8 = vadd.f32 %v1813_v35, %v1728_v48 }
 0x3d0   : > { %2394 = vtanh.f32 %v1822_v8 }
 0x3db   : > { %v2393_v9 = vpop.eup %2392 }
 0x3dc   : > { %v1831_v49 = vmul.f32 %v2393_v9, %v2389_v62 }
 0x3dd   : > { %v2395_v50 = vpop.eup %2394 }
 0x3de   : > { %v1830_v51 = vmul.f32 %v2395_v50, %v2391_v4  ;;  %v1833_v54 = vadd.f32 %v1831_v49, %v1829_v0 }
 0x3e0   : > { %v1832_v55 = vadd.f32 %v1830_v51, %v1828_v53  ;;  %1835 = vst [vmem:[%s313_s19 + $0x8] sm:$0xff] %v1833_v54 }
 0x3e2   : > { %1834 = vst [vmem:[%s313_s19] sm:$0xff] %v1832_v55 }
 0x3e3   : > { %2411 = shalt.err (!%p2408_p3)
}
 0x3e4   : > { %s2412_s10 = scalar_lea.hbm %s3191_s23, 256  ;;  %s2416_s18 = scalar_lea.hbm %s3243_s8, 512 }
 0x3e5   : > { %p2413_p4 = scmp.ne.s32.totalorder %s3191_s23, %s2412_s10  ;;  %p2417_p9 = scmp.lt.s32.totalorder %s3191_s23, %s3243_s8 }
 0x3e6   : > { %p2418_p10 = scmp.lt.s32.totalorder %s2416_s18, %s2412_s10 }
 0x3e7   : > { %p2414_p7 = pnand %p2413_p4, %p2547_p5 }
 0x3e8   : > { %p2419_p11 = por %p2418_p10, %p2417_p9 }
 0x3e9   : > { %p2415_p8 = pneg %p2414_p7 }
 0x3eb   : > { %p2420_p12 = pnand %p2419_p11, %p2415_p8 }
 0x3ed   : > { %2423 = shalt.err (!%p2420_p12)
}
 0x3ee   : > { %s2462_s22 = smov 128   ;;  %s2463_s24 = smov 8  }
 0x3ef   : > { %2331 = dma.vmem_to_hbm [thread:$0]  (%p2547_p5), %s3193_s20, 256, %s3191_s23, %s3195_s9, %s2462_s22, %s2462_s22, %s2463_s24  }
 0x3f0 PF: > { %p2337_p13 = scmp.ge.s32.totalorder %s2458_s30, 2  ;;  %s1865_s12 = sand.u32 1, %s2446_s27  }
 0x3f1   : > { %s1866_s25 = scalar_lea.sflag [#allocation3], %s1865_s12 }
 0x3f2   : > { %p2334_p0 = pnand %p2337_p13, %p2551_p6 }
 0x3f4   : > { %p2335_p1 = pneg %p2334_p0 }
 0x3f6   : > { %2441 = dma.done.wait (%p2335_p1), %s1866_s25, 256  }
 0x3f7   : > { %2443 = vsyncadd (%p2335_p1), %s1866_s25, 4294967040  ;;  %p18_p2 = scmp.ge.s32.totalorder %s2534_s11, 4   ;;  %s3246_s27 = smov %s2450_s28 }
 0x3f8   : > { %s3247_s28 = smov %s2454_s29  ;;  %s3248_s29 = smov %s2545_s14 }
 0x3f9   : > { %s3249_s30 = smov %s2534_s11  ;;  %20 = sbr.rel (!%p18_p2) target bundleno = 3 (0x3), region = 96 }
 0x3fe   :  { %1871 = vsyncpa [#allocation3], 1 }
 0x3ff   :  { %1873 = vsyncpa [#allocation3 + $0x1], 1 }

</bundles_post_ra>
